<compile_context>
chip_gen: v5e
topology: v5e:2x2
jax: 0.10.0
libtpu: 0.0.40
codegen_flags: <defaults>
</compile_context>

<pallas_src>
import functools

import jax
import jax.numpy as jnp
from jax import lax
from jax.experimental import pallas as pl
from jax.experimental.pallas import tpu as pltpu

# TODO(synk): the optional `mask` argument of SLDS_loss.forward (default None)
# is not implemented; only the mask=None path is reproduced.

_LANES = 128
_MAX_TS = 64          # sublane rows per spatial tile (64 * 128 = 8192 px/tile)


def _slds_kernel(logs_ref, yb_ref, acc_ref, *, C, hw, ts, weight_bg,
                 needs_mask):
    """Accumulates the per-batch partial sums for all four SLDS sub-losses.

    Block shapes (batch dim squeezed):
      logs_ref, yb_ref : (C, ts, 128)
      acc_ref          : (num_acc, 8, 128)   resident VMEM accumulator

    Accumulator rows:
      0: ce_sl   1: ce_ds   2: tp_sl   3: yvol_sl   4: pvol_sl
      5+3j / 6+3j / 7+3j: tp / yvol / pvol of DS foreground channel j
                          (original channel j+2), j = 0 .. C-3
    """
    t = pl.program_id(1)

    @pl.when(t == 0)
    def _init():
        acc_ref[...] = jnp.zeros_like(acc_ref)

    # Per-channel (ts, 128) slabs, computed in f32 regardless of input dtype.
    L = [logs_ref[c].astype(jnp.float32) for c in range(C)]
    Y = [yb_ref[c].astype(jnp.float32) for c in range(C)]

    if needs_mask:
        row = lax.broadcasted_iota(jnp.int32, (ts, _LANES), 0)
        lane = lax.broadcasted_iota(jnp.int32, (ts, _LANES), 1)
        gpix = (t * ts + row) * _LANES + lane
        mask = (gpix < hw).astype(jnp.float32)
        msk = lambda x: x * mask
    else:
        msk = lambda x: x

    # Channel maxima (pure VPU elementwise, no cross-sublane reductions).
    m01 = jnp.maximum(L[0], L[1])
    m_all = m01
    for c in range(2, C):
        m_all = jnp.maximum(m_all, L[c])

    # ---- "SL" split: logits [max(all logs), logs[1]] ------------------------
    e1_sl = jnp.exp(L[1] - m_all)                 # exp(m_all - m_all) == 1
    denom_sl = 1.0 + e1_sl
    pred_sl = e1_sl * pl.reciprocal(denom_sl)     # softmax prob of fg channel
    log_denom_sl = jnp.log(denom_sl)

    y_sl_bg = Y[0]
    for c in range(2, C):
        y_sl_bg = y_sl_bg + Y[c]
    y_sl_fg = Y[1]
    tgt_fg = y_sl_fg > y_sl_bg                    # argmax (first max wins)
    ce_sl = log_denom_sl - jnp.where(tgt_fg, L[1] - m_all, 0.0)

    # ---- "DS" split: logits [max(logs0, logs1), logs[2:]] -------------------
    e_bg_ds = jnp.exp(m01 - m_all)
    e_fg_ds = [jnp.exp(L[c] - m_all) for c in range(2, C)]
    denom_ds = e_bg_ds
    for e in e_fg_ds:
        denom_ds = denom_ds + e
    inv_ds = pl.reciprocal(denom_ds)              # shared by all fg channels
    log_denom_ds = jnp.log(denom_ds)

    best_val = Y[0] + Y[1]                        # running argmax of yb_oh_ds
    best_logit = m01
    best_w = jnp.full_like(m01, weight_bg)
    for c in range(2, C):
        take = Y[c] > best_val
        best_val = jnp.where(take, Y[c], best_val)
        best_logit = jnp.where(take, L[c], best_logit)
        best_w = jnp.where(take, 1.0, best_w)
    ce_ds = best_w * (log_denom_ds - (best_logit - m_all))

    # ---- accumulate ----------------------------------------------------------
    def fold_rows(v):
        # (ts, 128) -> (8, 128) by summing aligned (8, 128) chunks (pure VPU).
        r = v[0:8]
        for b in range(1, ts // 8):
            r = r + v[b * 8:(b + 1) * 8]
        return r

    def acc(k, v):
        acc_ref[k] += fold_rows(msk(v))

    acc(0, ce_sl)
    acc(1, ce_ds)
    acc(2, pred_sl * y_sl_fg)
    acc(3, y_sl_fg)
    acc(4, pred_sl)
    for j, c in enumerate(range(2, C)):
        p = e_fg_ds[j] * inv_ds
        acc(5 + 3 * j, p * Y[c])
        acc(6 + 3 * j, Y[c])
        acc(7 + 3 * j, p)


def slds_loss(logs, yb_oh, *, weight_bg, n_fg_classes, weight_ds=1.0,
              weight_sl=1.0, eps=1e-5):
    assert logs.shape == yb_oh.shape
    N, C = int(logs.shape[0]), int(logs.shape[1])
    assert C >= 3, "SLDS_loss needs at least 3 channels (bg + >= 2 fg)."
    assert n_fg_classes == C - 1, "weighted CE needs n_fg_classes == C - 1"

    hw = 1
    for s in logs.shape[2:]:
        hw *= int(s)

    rows = -(-hw // _LANES)                       # cdiv
    if rows <= _MAX_TS:
        ts = ((rows + 7) // 8) * 8                # single spatial tile
    else:
        ts = _MAX_TS
    rows_pad = ((rows + ts - 1) // ts) * ts
    n_tiles = rows_pad // ts
    hw_pad = rows_pad * _LANES
    needs_mask = hw_pad != hw

    logs3 = logs.reshape(N, C, hw)
    yb3 = yb_oh.reshape(N, C, hw)
    if needs_mask:
        pad = hw_pad - hw
        logs3 = jnp.pad(logs3, ((0, 0), (0, 0), (0, pad)))
        yb3 = jnp.pad(yb3, ((0, 0), (0, 0), (0, pad)))
    logs4 = logs3.reshape(N, C, rows_pad, _LANES)
    yb4 = yb3.reshape(N, C, rows_pad, _LANES)

    num_acc = 5 + 3 * (C - 2)
    kernel = functools.partial(
        _slds_kernel, C=C, hw=hw, ts=ts, weight_bg=float(weight_bg),
        needs_mask=needs_mask)

    out = pl.pallas_call(
        kernel,
        out_shape=jax.ShapeDtypeStruct((N, num_acc, 8, _LANES), jnp.float32),
        grid=(N, n_tiles),
        in_specs=[
            pl.BlockSpec((None, C, ts, _LANES), lambda n, t: (n, 0, t, 0)),
            pl.BlockSpec((None, C, ts, _LANES), lambda n, t: (n, 0, t, 0)),
        ],
        out_specs=pl.BlockSpec((None, num_acc, 8, _LANES),
                               lambda n, t: (n, 0, 0, 0)),
        compiler_params=pltpu.CompilerParams(
            dimension_semantics=("parallel", "arbitrary"),
            vmem_limit_bytes=32 * 1024 * 1024,
        ),
    )(logs4, yb4)

    sums = jnp.sum(out, axis=(2, 3))              # (N, num_acc)
    eps = float(eps)
    n_px = float(N * hw)

    # CE terms: mean over all N * HW pixels.
    ce_sl = jnp.sum(sums[:, 0]) / n_px
    ce_ds = jnp.sum(sums[:, 1]) / n_px

    # Unweighted dice on the SL split (single foreground channel).
    dice_sl = (sums[:, 2] + eps) / (0.5 * sums[:, 3] + 0.5 * sums[:, 4] + eps)
    loss_dice_sl = 1.0 - jnp.mean(dice_sl)

    # Weighted dice on the DS split (C-2 foreground channels).
    w1 = (2.0 - weight_bg) * 0.5
    w2 = weight_bg * 0.5
    tp_ds = sums[:, 5::3]
    yv_ds = sums[:, 6::3]
    pv_ds = sums[:, 7::3]
    dice_ds = (tp_ds + eps) / (w1 * yv_ds + w2 * pv_ds + eps)
    loss_dice_ds = 1.0 - jnp.mean(dice_ds)

    loss_sl = ce_sl + loss_dice_sl
    loss_ds = ce_ds + loss_dice_ds
    return weight_sl * loss_sl + weight_ds * loss_ds


def _reference_slds(logs, yb_oh, weight_bg, n_fg_classes, weight_ds=1.0,
                    weight_sl=1.0, eps=1e-5):
    """Pure-JAX port of the PyTorch SLDS_loss (mask=None path)."""
    logs = logs.astype(jnp.float32)
    yb_oh = yb_oh.astype(jnp.float32)

    logs_sl_bg = jnp.max(jnp.concatenate([logs[:, 0:], logs[:, 2:]], axis=1),
                         axis=1, keepdims=True)
    logs_sl = jnp.concatenate([logs_sl_bg, logs[:, 1:2]], axis=1)
    yb_sl = jnp.concatenate(
        [yb_oh[:, 0:1] + jnp.sum(yb_oh[:, 2:], axis=1, keepdims=True),
         yb_oh[:, 1:2]], axis=1)

    logs_ds_bg = jnp.max(logs[:, :2], axis=1, keepdims=True)
    logs_ds = jnp.concatenate([logs_ds_bg, logs[:, 2:]], axis=1)
    yb_ds = jnp.concatenate(
        [jnp.sum(yb_oh[:, :2], axis=1, keepdims=True), yb_oh[:, 2:]], axis=1)

    def ce(lg, yb, w=None):
        tgt = jnp.argmax(yb, axis=1)
        logp = jax.nn.log_softmax(lg, axis=1)
        nll = -jnp.take_along_axis(logp, tgt[:, None], axis=1)[:, 0]
        if w is not None:
            nll = nll * w[tgt]
        return jnp.mean(nll)

    def dice(lg, yb, w1, w2):
        pred = jax.nn.softmax(lg, axis=1)[:, 1:]
        y = yb[:, 1:]
        red = tuple(range(2, pred.ndim))
        tp = jnp.sum(y * pred, axis=red)
        yv = jnp.sum(y, axis=red)
        pv = jnp.sum(pred, axis=red)
        d = (tp + eps) / (w1 * yv + w2 * pv + eps)
        return 1.0 - jnp.mean(d)

    w_vec = jnp.array([weight_bg] + [1.0] * (n_fg_classes - 1), jnp.float32)
    loss_sl = ce(logs_sl, yb_sl) + dice(logs_sl, yb_sl, 0.5, 0.5)
    loss_ds = ce(logs_ds, yb_ds, w_vec) + dice(logs_ds, yb_ds,
                                               (2.0 - weight_bg) * 0.5,
                                               weight_bg * 0.5)
    return weight_sl * loss_sl + weight_ds * loss_ds


if __name__ == "__main__":
    key = jax.random.PRNGKey(0)
    k1, k2 = jax.random.split(key)

    N, C, H, W = 2, 4, 16, 16
    logs = jax.random.normal(k1, (N, C, H, W), dtype=jnp.float32)
    labels = jax.random.randint(k2, (N, H, W), 0, C)
    yb_oh = jax.nn.one_hot(labels, C, axis=1, dtype=jnp.float32)  # (N,C,H,W)

    weight_bg = 0.5
    n_fg_classes = C - 1

    loss = slds_loss(logs, yb_oh, weight_bg=weight_bg,
                     n_fg_classes=n_fg_classes)
    loss = jax.block_until_ready(loss)

    ref = jax.block_until_ready(
        _reference_slds(logs, yb_oh, weight_bg, n_fg_classes))
    assert jnp.allclose(loss, ref, atol=1e-5, rtol=1e-4), (loss, ref)

    print("KERNEL_OK")
</pallas_src>

<mosaic_0001>
module attributes {stable_mosaic.version = 11 : i64} {
  func.func @_slds_kernel(%arg0: i32, %arg1: i32, %arg2: memref<1x4x8x128xf32, #tpu.memory_space<vmem>>, %arg3: memref<1x4x8x128xf32, #tpu.memory_space<vmem>>, %arg4: memref<1x11x8x128xf32, #tpu.memory_space<vmem>>) attributes {dimension_semantics = [#tpu.dimension_semantics<parallel>, #tpu.dimension_semantics<arbitrary>], iteration_bounds = array<i64: 2, 1>, scalar_prefetch = 0 : i64, scratch_operands = 0 : i64, tpu.core_type = #tpu.core_type<tc>, window_params = [{transform_indices = @transform_0, window_bounds = array<i64: 1, 4, 8, 128>}, {transform_indices = @transform_1, window_bounds = array<i64: 1, 4, 8, 128>}, {transform_indices = @transform_2, window_bounds = array<i64: 1, 11, 8, 128>}]} {
    %c0_i32 = arith.constant 0 : i32
    %0 = arith.cmpi eq, %arg1, %c0_i32 : i32
    %1 = arith.extui %0 : i1 to i32
    %c0_i32_0 = arith.constant 0 : i32
    %2 = arith.cmpi ne, %1, %c0_i32_0 : i32
    scf.if %2 {
      %cst_114 = arith.constant 0.000000e+00 : f32
      %154 = vector.broadcast %cst_114 : f32 to vector<11x8x128xf32>
      %c0_115 = arith.constant 0 : index
      %c0_116 = arith.constant 0 : index
      %c0_117 = arith.constant 0 : index
      %c0_118 = arith.constant 0 : index
      %155 = vector.load %arg4[%c0_115, %c0_116, %c0_117, %c0_118] : memref<1x11x8x128xf32, #tpu.memory_space<vmem>>, vector<1x11x8x128xf32>
      %156 = vector.shape_cast %155 : vector<1x11x8x128xf32> to vector<11x8x128xf32>
      %157 = vector.shape_cast %154 : vector<11x8x128xf32> to vector<1x11x8x128xf32>
      tpu.vector_store %arg4[%c0_115, %c0_116, %c0_117, %c0_118], %157 {strides = array<i32>} : memref<1x11x8x128xf32, #tpu.memory_space<vmem>>, vector<1x11x8x128xf32>,
    } else {
    }
    %c0 = arith.constant 0 : index
    %c0_1 = arith.constant 0 : index
    %c0_2 = arith.constant 0 : index
    %c0_3 = arith.constant 0 : index
    %3 = vector.load %arg2[%c0, %c0_1, %c0_2, %c0_3] : memref<1x4x8x128xf32, #tpu.memory_space<vmem>>, vector<1x1x8x128xf32>
    %4 = vector.shape_cast %3 : vector<1x1x8x128xf32> to vector<8x128xf32>
    %c0_4 = arith.constant 0 : index
    %c1 = arith.constant 1 : index
    %c0_5 = arith.constant 0 : index
    %c0_6 = arith.constant 0 : index
    %5 = vector.load %arg2[%c0_4, %c1, %c0_5, %c0_6] : memref<1x4x8x128xf32, #tpu.memory_space<vmem>>, vector<1x1x8x128xf32>
    %6 = vector.shape_cast %5 : vector<1x1x8x128xf32> to vector<8x128xf32>
    %c0_7 = arith.constant 0 : index
    %c2 = arith.constant 2 : index
    %c0_8 = arith.constant 0 : index
    %c0_9 = arith.constant 0 : index
    %7 = vector.load %arg2[%c0_7, %c2, %c0_8, %c0_9] : memref<1x4x8x128xf32, #tpu.memory_space<vmem>>, vector<1x1x8x128xf32>
    %8 = vector.shape_cast %7 : vector<1x1x8x128xf32> to vector<8x128xf32>
    %c0_10 = arith.constant 0 : index
    %c3 = arith.constant 3 : index
    %c0_11 = arith.constant 0 : index
    %c0_12 = arith.constant 0 : index
    %9 = vector.load %arg2[%c0_10, %c3, %c0_11, %c0_12] : memref<1x4x8x128xf32, #tpu.memory_space<vmem>>, vector<1x1x8x128xf32>
    %10 = vector.shape_cast %9 : vector<1x1x8x128xf32> to vector<8x128xf32>
    %c0_13 = arith.constant 0 : index
    %c0_14 = arith.constant 0 : index
    %c0_15 = arith.constant 0 : index
    %c0_16 = arith.constant 0 : index
    %11 = vector.load %arg3[%c0_13, %c0_14, %c0_15, %c0_16] : memref<1x4x8x128xf32, #tpu.memory_space<vmem>>, vector<1x1x8x128xf32>
    %12 = vector.shape_cast %11 : vector<1x1x8x128xf32> to vector<8x128xf32>
    %c0_17 = arith.constant 0 : index
    %c1_18 = arith.constant 1 : index
    %c0_19 = arith.constant 0 : index
    %c0_20 = arith.constant 0 : index
    %13 = vector.load %arg3[%c0_17, %c1_18, %c0_19, %c0_20] : memref<1x4x8x128xf32, #tpu.memory_space<vmem>>, vector<1x1x8x128xf32>
    %14 = vector.shape_cast %13 : vector<1x1x8x128xf32> to vector<8x128xf32>
    %c0_21 = arith.constant 0 : index
    %c2_22 = arith.constant 2 : index
    %c0_23 = arith.constant 0 : index
    %c0_24 = arith.constant 0 : index
    %15 = vector.load %arg3[%c0_21, %c2_22, %c0_23, %c0_24] : memref<1x4x8x128xf32, #tpu.memory_space<vmem>>, vector<1x1x8x128xf32>
    %16 = vector.shape_cast %15 : vector<1x1x8x128xf32> to vector<8x128xf32>
    %c0_25 = arith.constant 0 : index
    %c3_26 = arith.constant 3 : index
    %c0_27 = arith.constant 0 : index
    %c0_28 = arith.constant 0 : index
    %17 = vector.load %arg3[%c0_25, %c3_26, %c0_27, %c0_28] : memref<1x4x8x128xf32, #tpu.memory_space<vmem>>, vector<1x1x8x128xf32>
    %18 = vector.shape_cast %17 : vector<1x1x8x128xf32> to vector<8x128xf32>
    %19 = tpu.iota {dimensions = array<i32: 0>} : vector<8x128xi32>
    %20 = tpu.iota {dimensions = array<i32: 1>} : vector<8x128xi32>
    %c8_i32 = arith.constant 8 : i32
    %21 = arith.muli %arg1, %c8_i32 : i32
    %22 = vector.broadcast %21 : i32 to vector<8x128xi32>
    %23 = arith.addi %22, %19 : vector<8x128xi32>
    %c128_i32 = arith.constant 128 : i32
    %24 = vector.broadcast %c128_i32 : i32 to vector<8x128xi32>
    %25 = arith.muli %23, %24 : vector<8x128xi32>
    %26 = arith.addi %25, %20 : vector<8x128xi32>
    %c256_i32 = arith.constant 256 : i32
    %27 = vector.broadcast %c256_i32 : i32 to vector<8x128xi32>
    %28 = arith.cmpi slt, %26, %27 : vector<8x128xi32>
    %29 = arith.extui %28 : vector<8x128xi1> to vector<8x128xi32>
    %30 = arith.sitofp %29 : vector<8x128xi32> to vector<8x128xf32>
    %31 = arith.maximumf %4, %6 : vector<8x128xf32>
    %32 = arith.maximumf %31, %8 : vector<8x128xf32>
    %33 = arith.maximumf %32, %10 : vector<8x128xf32>
    %34 = arith.subf %6, %33 : vector<8x128xf32>
    %35 = math.exp %34 : vector<8x128xf32>
    %cst = arith.constant 1.000000e+00 : f32
    %36 = vector.broadcast %cst : f32 to vector<8x128xf32>
    %37 = arith.addf %36, %35 : vector<8x128xf32>
    %38 = tpu.reciprocal %37 : vector<8x128xf32> -> vector<8x128xf32>
    %39 = arith.mulf %35, %38 : vector<8x128xf32>
    %40 = math.log %37 : vector<8x128xf32>
    %41 = arith.addf %12, %16 : vector<8x128xf32>
    %42 = arith.addf %41, %18 : vector<8x128xf32>
    %43 = arith.cmpf ogt, %14, %42 : vector<8x128xf32>
    %44 = arith.subf %6, %33 : vector<8x128xf32>
    %cst_29 = arith.constant 0.000000e+00 : f32
    %45 = vector.broadcast %cst_29 : f32 to vector<8x128xf32>
    %46 = arith.select %43, %44, %45 : vector<8x128xi1>, vector<8x128xf32>
    %47 = arith.subf %40, %46 : vector<8x128xf32>
    %48 = arith.subf %31, %33 : vector<8x128xf32>
    %49 = math.exp %48 : vector<8x128xf32>
    %50 = arith.subf %8, %33 : vector<8x128xf32>
    %51 = math.exp %50 : vector<8x128xf32>
    %52 = arith.subf %10, %33 : vector<8x128xf32>
    %53 = math.exp %52 : vector<8x128xf32>
    %54 = arith.addf %49, %51 : vector<8x128xf32>
    %55 = arith.addf %54, %53 : vector<8x128xf32>
    %56 = tpu.reciprocal %55 : vector<8x128xf32> -> vector<8x128xf32>
    %57 = math.log %55 : vector<8x128xf32>
    %58 = arith.addf %12, %14 : vector<8x128xf32>
    %cst_30 = arith.constant 5.000000e-01 : f32
    %59 = vector.broadcast %cst_30 : f32 to vector<8x128xf32>
    %60 = arith.cmpf ogt, %16, %58 : vector<8x128xf32>
    %61 = arith.select %60, %16, %58 : vector<8x128xi1>, vector<8x128xf32>
    %62 = arith.select %60, %8, %31 : vector<8x128xi1>, vector<8x128xf32>
    %cst_31 = arith.constant 1.000000e+00 : f32
    %63 = vector.broadcast %cst_31 : f32 to vector<8x128xf32>
    %64 = arith.select %60, %63, %59 : vector<8x128xi1>, vector<8x128xf32>
    %65 = arith.cmpf ogt, %18, %61 : vector<8x128xf32>
    %66 = arith.select %65, %10, %62 : vector<8x128xi1>, vector<8x128xf32>
    %cst_32 = arith.constant 1.000000e+00 : f32
    %67 = vector.broadcast %cst_32 : f32 to vector<8x128xf32>
    %68 = arith.select %65, %67, %64 : vector<8x128xi1>, vector<8x128xf32>
    %69 = arith.subf %66, %33 : vector<8x128xf32>
    %70 = arith.subf %57, %69 : vector<8x128xf32>
    %71 = arith.mulf %68, %70 : vector<8x128xf32>
    %c0_33 = arith.constant 0 : index
    %c0_34 = arith.constant 0 : index
    %c0_35 = arith.constant 0 : index
    %c0_36 = arith.constant 0 : index
    %72 = vector.load %arg4[%c0_33, %c0_34, %c0_35, %c0_36] : memref<1x11x8x128xf32, #tpu.memory_space<vmem>>, vector<1x1x8x128xf32>
    %73 = vector.shape_cast %72 : vector<1x1x8x128xf32> to vector<8x128xf32>
    %74 = arith.mulf %47, %30 : vector<8x128xf32>
    %75 = arith.addf %73, %74 : vector<8x128xf32>
    %c0_37 = arith.constant 0 : index
    %c0_38 = arith.constant 0 : index
    %c0_39 = arith.constant 0 : index
    %c0_40 = arith.constant 0 : index
    %76 = vector.load %arg4[%c0_37, %c0_38, %c0_39, %c0_40] : memref<1x11x8x128xf32, #tpu.memory_space<vmem>>, vector<1x1x8x128xf32>
    %77 = vector.shape_cast %76 : vector<1x1x8x128xf32> to vector<8x128xf32>
    %78 = vector.shape_cast %75 : vector<8x128xf32> to vector<1x1x8x128xf32>
    tpu.vector_store %arg4[%c0_37, %c0_38, %c0_39, %c0_40], %78 {strides = array<i32>} : memref<1x11x8x128xf32, #tpu.memory_space<vmem>>, vector<1x1x8x128xf32>,
    %c0_41 = arith.constant 0 : index
    %c1_42 = arith.constant 1 : index
    %c0_43 = arith.constant 0 : index
    %c0_44 = arith.constant 0 : index
    %79 = vector.load %arg4[%c0_41, %c1_42, %c0_43, %c0_44] : memref<1x11x8x128xf32, #tpu.memory_space<vmem>>, vector<1x1x8x128xf32>
    %80 = vector.shape_cast %79 : vector<1x1x8x128xf32> to vector<8x128xf32>
    %81 = arith.mulf %71, %30 : vector<8x128xf32>
    %82 = arith.addf %80, %81 : vector<8x128xf32>
    %c0_45 = arith.constant 0 : index
    %c1_46 = arith.constant 1 : index
    %c0_47 = arith.constant 0 : index
    %c0_48 = arith.constant 0 : index
    %83 = vector.load %arg4[%c0_45, %c1_46, %c0_47, %c0_48] : memref<1x11x8x128xf32, #tpu.memory_space<vmem>>, vector<1x1x8x128xf32>
    %84 = vector.shape_cast %83 : vector<1x1x8x128xf32> to vector<8x128xf32>
    %85 = vector.shape_cast %82 : vector<8x128xf32> to vector<1x1x8x128xf32>
    tpu.vector_store %arg4[%c0_45, %c1_46, %c0_47, %c0_48], %85 {strides = array<i32>} : memref<1x11x8x128xf32, #tpu.memory_space<vmem>>, vector<1x1x8x128xf32>,
    %86 = arith.mulf %39, %14 : vector<8x128xf32>
    %c0_49 = arith.constant 0 : index
    %c2_50 = arith.constant 2 : index
    %c0_51 = arith.constant 0 : index
    %c0_52 = arith.constant 0 : index
    %87 = vector.load %arg4[%c0_49, %c2_50, %c0_51, %c0_52] : memref<1x11x8x128xf32, #tpu.memory_space<vmem>>, vector<1x1x8x128xf32>
    %88 = vector.shape_cast %87 : vector<1x1x8x128xf32> to vector<8x128xf32>
    %89 = arith.mulf %86, %30 : vector<8x128xf32>
    %90 = arith.addf %88, %89 : vector<8x128xf32>
    %c0_53 = arith.constant 0 : index
    %c2_54 = arith.constant 2 : index
    %c0_55 = arith.constant 0 : index
    %c0_56 = arith.constant 0 : index
    %91 = vector.load %arg4[%c0_53, %c2_54, %c0_55, %c0_56] : memref<1x11x8x128xf32, #tpu.memory_space<vmem>>, vector<1x1x8x128xf32>
    %92 = vector.shape_cast %91 : vector<1x1x8x128xf32> to vector<8x128xf32>
    %93 = vector.shape_cast %90 : vector<8x128xf32> to vector<1x1x8x128xf32>
    tpu.vector_store %arg4[%c0_53, %c2_54, %c0_55, %c0_56], %93 {strides = array<i32>} : memref<1x11x8x128xf32, #tpu.memory_space<vmem>>, vector<1x1x8x128xf32>,
    %c0_57 = arith.constant 0 : index
    %c3_58 = arith.constant 3 : index
    %c0_59 = arith.constant 0 : index
    %c0_60 = arith.constant 0 : index
    %94 = vector.load %arg4[%c0_57, %c3_58, %c0_59, %c0_60] : memref<1x11x8x128xf32, #tpu.memory_space<vmem>>, vector<1x1x8x128xf32>
    %95 = vector.shape_cast %94 : vector<1x1x8x128xf32> to vector<8x128xf32>
    %96 = arith.mulf %14, %30 : vector<8x128xf32>
    %97 = arith.addf %95, %96 : vector<8x128xf32>
    %c0_61 = arith.constant 0 : index
    %c3_62 = arith.constant 3 : index
    %c0_63 = arith.constant 0 : index
    %c0_64 = arith.constant 0 : index
    %98 = vector.load %arg4[%c0_61, %c3_62, %c0_63, %c0_64] : memref<1x11x8x128xf32, #tpu.memory_space<vmem>>, vector<1x1x8x128xf32>
    %99 = vector.shape_cast %98 : vector<1x1x8x128xf32> to vector<8x128xf32>
    %100 = vector.shape_cast %97 : vector<8x128xf32> to vector<1x1x8x128xf32>
    tpu.vector_store %arg4[%c0_61, %c3_62, %c0_63, %c0_64], %100 {strides = array<i32>} : memref<1x11x8x128xf32, #tpu.memory_space<vmem>>, vector<1x1x8x128xf32>,
    %c0_65 = arith.constant 0 : index
    %c4 = arith.constant 4 : index
    %c0_66 = arith.constant 0 : index
    %c0_67 = arith.constant 0 : index
    %101 = vector.load %arg4[%c0_65, %c4, %c0_66, %c0_67] : memref<1x11x8x128xf32, #tpu.memory_space<vmem>>, vector<1x1x8x128xf32>
    %102 = vector.shape_cast %101 : vector<1x1x8x128xf32> to vector<8x128xf32>
    %103 = arith.mulf %39, %30 : vector<8x128xf32>
    %104 = arith.addf %102, %103 : vector<8x128xf32>
    %c0_68 = arith.constant 0 : index
    %c4_69 = arith.constant 4 : index
    %c0_70 = arith.constant 0 : index
    %c0_71 = arith.constant 0 : index
    %105 = vector.load %arg4[%c0_68, %c4_69, %c0_70, %c0_71] : memref<1x11x8x128xf32, #tpu.memory_space<vmem>>, vector<1x1x8x128xf32>
    %106 = vector.shape_cast %105 : vector<1x1x8x128xf32> to vector<8x128xf32>
    %107 = vector.shape_cast %104 : vector<8x128xf32> to vector<1x1x8x128xf32>
    tpu.vector_store %arg4[%c0_68, %c4_69, %c0_70, %c0_71], %107 {strides = array<i32>} : memref<1x11x8x128xf32, #tpu.memory_space<vmem>>, vector<1x1x8x128xf32>,
    %108 = arith.mulf %51, %56 : vector<8x128xf32>
    %109 = arith.mulf %108, %16 : vector<8x128xf32>
    %c0_72 = arith.constant 0 : index
    %c5 = arith.constant 5 : index
    %c0_73 = arith.constant 0 : index
    %c0_74 = arith.constant 0 : index
    %110 = vector.load %arg4[%c0_72, %c5, %c0_73, %c0_74] : memref<1x11x8x128xf32, #tpu.memory_space<vmem>>, vector<1x1x8x128xf32>
    %111 = vector.shape_cast %110 : vector<1x1x8x128xf32> to vector<8x128xf32>
    %112 = arith.mulf %109, %30 : vector<8x128xf32>
    %113 = arith.addf %111, %112 : vector<8x128xf32>
    %c0_75 = arith.constant 0 : index
    %c5_76 = arith.constant 5 : index
    %c0_77 = arith.constant 0 : index
    %c0_78 = arith.constant 0 : index
    %114 = vector.load %arg4[%c0_75, %c5_76, %c0_77, %c0_78] : memref<1x11x8x128xf32, #tpu.memory_space<vmem>>, vector<1x1x8x128xf32>
    %115 = vector.shape_cast %114 : vector<1x1x8x128xf32> to vector<8x128xf32>
    %116 = vector.shape_cast %113 : vector<8x128xf32> to vector<1x1x8x128xf32>
    tpu.vector_store %arg4[%c0_75, %c5_76, %c0_77, %c0_78], %116 {strides = array<i32>} : memref<1x11x8x128xf32, #tpu.memory_space<vmem>>, vector<1x1x8x128xf32>,
    %c0_79 = arith.constant 0 : index
    %c6 = arith.constant 6 : index
    %c0_80 = arith.constant 0 : index
    %c0_81 = arith.constant 0 : index
    %117 = vector.load %arg4[%c0_79, %c6, %c0_80, %c0_81] : memref<1x11x8x128xf32, #tpu.memory_space<vmem>>, vector<1x1x8x128xf32>
    %118 = vector.shape_cast %117 : vector<1x1x8x128xf32> to vector<8x128xf32>
    %119 = arith.mulf %16, %30 : vector<8x128xf32>
    %120 = arith.addf %118, %119 : vector<8x128xf32>
    %c0_82 = arith.constant 0 : index
    %c6_83 = arith.constant 6 : index
    %c0_84 = arith.constant 0 : index
    %c0_85 = arith.constant 0 : index
    %121 = vector.load %arg4[%c0_82, %c6_83, %c0_84, %c0_85] : memref<1x11x8x128xf32, #tpu.memory_space<vmem>>, vector<1x1x8x128xf32>
    %122 = vector.shape_cast %121 : vector<1x1x8x128xf32> to vector<8x128xf32>
    %123 = vector.shape_cast %120 : vector<8x128xf32> to vector<1x1x8x128xf32>
    tpu.vector_store %arg4[%c0_82, %c6_83, %c0_84, %c0_85], %123 {strides = array<i32>} : memref<1x11x8x128xf32, #tpu.memory_space<vmem>>, vector<1x1x8x128xf32>,
    %c0_86 = arith.constant 0 : index
    %c7 = arith.constant 7 : index
    %c0_87 = arith.constant 0 : index
    %c0_88 = arith.constant 0 : index
    %124 = vector.load %arg4[%c0_86, %c7, %c0_87, %c0_88] : memref<1x11x8x128xf32, #tpu.memory_space<vmem>>, vector<1x1x8x128xf32>
    %125 = vector.shape_cast %124 : vector<1x1x8x128xf32> to vector<8x128xf32>
    %126 = arith.mulf %108, %30 : vector<8x128xf32>
    %127 = arith.addf %125, %126 : vector<8x128xf32>
    %c0_89 = arith.constant 0 : index
    %c7_90 = arith.constant 7 : index
    %c0_91 = arith.constant 0 : index
    %c0_92 = arith.constant 0 : index
    %128 = vector.load %arg4[%c0_89, %c7_90, %c0_91, %c0_92] : memref<1x11x8x128xf32, #tpu.memory_space<vmem>>, vector<1x1x8x128xf32>
    %129 = vector.shape_cast %128 : vector<1x1x8x128xf32> to vector<8x128xf32>
    %130 = vector.shape_cast %127 : vector<8x128xf32> to vector<1x1x8x128xf32>
    tpu.vector_store %arg4[%c0_89, %c7_90, %c0_91, %c0_92], %130 {strides = array<i32>} : memref<1x11x8x128xf32, #tpu.memory_space<vmem>>, vector<1x1x8x128xf32>,
    %131 = arith.mulf %53, %56 : vector<8x128xf32>
    %132 = arith.mulf %131, %18 : vector<8x128xf32>
    %c0_93 = arith.constant 0 : index
    %c8 = arith.constant 8 : index
    %c0_94 = arith.constant 0 : index
    %c0_95 = arith.constant 0 : index
    %133 = vector.load %arg4[%c0_93, %c8, %c0_94, %c0_95] : memref<1x11x8x128xf32, #tpu.memory_space<vmem>>, vector<1x1x8x128xf32>
    %134 = vector.shape_cast %133 : vector<1x1x8x128xf32> to vector<8x128xf32>
    %135 = arith.mulf %132, %30 : vector<8x128xf32>
    %136 = arith.addf %134, %135 : vector<8x128xf32>
    %c0_96 = arith.constant 0 : index
    %c8_97 = arith.constant 8 : index
    %c0_98 = arith.constant 0 : index
    %c0_99 = arith.constant 0 : index
    %137 = vector.load %arg4[%c0_96, %c8_97, %c0_98, %c0_99] : memref<1x11x8x128xf32, #tpu.memory_space<vmem>>, vector<1x1x8x128xf32>
    %138 = vector.shape_cast %137 : vector<1x1x8x128xf32> to vector<8x128xf32>
    %139 = vector.shape_cast %136 : vector<8x128xf32> to vector<1x1x8x128xf32>
    tpu.vector_store %arg4[%c0_96, %c8_97, %c0_98, %c0_99], %139 {strides = array<i32>} : memref<1x11x8x128xf32, #tpu.memory_space<vmem>>, vector<1x1x8x128xf32>,
    %c0_100 = arith.constant 0 : index
    %c9 = arith.constant 9 : index
    %c0_101 = arith.constant 0 : index
    %c0_102 = arith.constant 0 : index
    %140 = vector.load %arg4[%c0_100, %c9, %c0_101, %c0_102] : memref<1x11x8x128xf32, #tpu.memory_space<vmem>>, vector<1x1x8x128xf32>
    %141 = vector.shape_cast %140 : vector<1x1x8x128xf32> to vector<8x128xf32>
    %142 = arith.mulf %18, %30 : vector<8x128xf32>
    %143 = arith.addf %141, %142 : vector<8x128xf32>
    %c0_103 = arith.constant 0 : index
    %c9_104 = arith.constant 9 : index
    %c0_105 = arith.constant 0 : index
    %c0_106 = arith.constant 0 : index
    %144 = vector.load %arg4[%c0_103, %c9_104, %c0_105, %c0_106] : memref<1x11x8x128xf32, #tpu.memory_space<vmem>>, vector<1x1x8x128xf32>
    %145 = vector.shape_cast %144 : vector<1x1x8x128xf32> to vector<8x128xf32>
    %146 = vector.shape_cast %143 : vector<8x128xf32> to vector<1x1x8x128xf32>
    tpu.vector_store %arg4[%c0_103, %c9_104, %c0_105, %c0_106], %146 {strides = array<i32>} : memref<1x11x8x128xf32, #tpu.memory_space<vmem>>, vector<1x1x8x128xf32>,
    %c0_107 = arith.constant 0 : index
    %c10 = arith.constant 10 : index
    %c0_108 = arith.constant 0 : index
    %c0_109 = arith.constant 0 : index
    %147 = vector.load %arg4[%c0_107, %c10, %c0_108, %c0_109] : memref<1x11x8x128xf32, #tpu.memory_space<vmem>>, vector<1x1x8x128xf32>
    %148 = vector.shape_cast %147 : vector<1x1x8x128xf32> to vector<8x128xf32>
    %149 = arith.mulf %131, %30 : vector<8x128xf32>
    %150 = arith.addf %148, %149 : vector<8x128xf32>
    %c0_110 = arith.constant 0 : index
    %c10_111 = arith.constant 10 : index
    %c0_112 = arith.constant 0 : index
    %c0_113 = arith.constant 0 : index
    %151 = vector.load %arg4[%c0_110, %c10_111, %c0_112, %c0_113] : memref<1x11x8x128xf32, #tpu.memory_space<vmem>>, vector<1x1x8x128xf32>
    %152 = vector.shape_cast %151 : vector<1x1x8x128xf32> to vector<8x128xf32>
    %153 = vector.shape_cast %150 : vector<8x128xf32> to vector<1x1x8x128xf32>
    tpu.vector_store %arg4[%c0_110, %c10_111, %c0_112, %c0_113], %153 {strides = array<i32>} : memref<1x11x8x128xf32, #tpu.memory_space<vmem>>, vector<1x1x8x128xf32>,
    return
  }
  func.func @transform_0(%arg0: i32, %arg1: i32) -> (i32, i32, i32, i32) {
    %c0_i32 = arith.constant 0 : i32
    %c0_i32_0 = arith.constant 0 : i32
    %c0_i32_1 = arith.constant 0 : i32
    return %arg0, %c0_i32, %arg1, %c0_i32_0 : i32, i32, i32, i32
  }
  func.func @transform_1(%arg0: i32, %arg1: i32) -> (i32, i32, i32, i32) {
    %c0_i32 = arith.constant 0 : i32
    %c0_i32_0 = arith.constant 0 : i32
    %c0_i32_1 = arith.constant 0 : i32
    return %arg0, %c0_i32, %arg1, %c0_i32_0 : i32, i32, i32, i32
  }
  func.func @transform_2(%arg0: i32, %arg1: i32) -> (i32, i32, i32, i32) {
    %c0_i32 = arith.constant 0 : i32
    %c0_i32_0 = arith.constant 0 : i32
    %c0_i32_1 = arith.constant 0 : i32
    %c0_i32_2 = arith.constant 0 : i32
    return %arg0, %c0_i32, %c0_i32_0, %c0_i32_1 : i32, i32, i32, i32
  }
}

</mosaic_0001>

<bundles_post_ra>
// kernel: tpu_custom_call.1
= control target key start
LH: loop header
LB: loop body
LE: loop exit
PB: predicated region body
PF: predicated region fallthrough
CT: control target
= control target key end

     0   :  { %7 = vsyncpa [#allocation3], 0  ;;  %s1041_s0 = inlined_call_operand.hbm [shape: f32[2,4,8,128], index: 0, kind: input, shape index: {}]   ;;  %s1042_s1 = inlined_call_operand.hbm [shape: f32[2,4,8,128], index: 1, kind: input, shape index: {}]   ;;  %s1043_s2 = inlined_call_operand.hbm [shape: f32[2,11,8,128], index: 2, kind: output, shape index: {}]  }
   0x1   :  { %9 = vsyncpa [#allocation3 + $0x1], 0 }
   0x2   :  { %10 = vsyncpa [#allocation6], 0 }
   0x3   :  { %12 = vsyncpa [#allocation6 + $0x1], 0 }
   0x4   :  { %13 = vsyncpa [#allocation4], 0 }
   0x5   :  { %15 = vsyncpa [#allocation4 + $0x1], 0  ;;  %s820_s9 = smov 0   ;;  %s822_s10 = smov 0  }
   0x6   :  { %s824_s11 = smov 0   ;;  %s826_s12 = smov 0  }
   0x7   :  { %s828_s13 = smov 0   ;;  %s830_s14 = smov 0  }
   0x8 LB: > { %s515_s15 = sadd.s32 4294967295, %s797_s14   ;;  %s516_s16 = sadd.s32 4294967294, %s797_s14   ;;  %s797_s14 = sphi %s830_s14, %s21_s14   ;;  %s793_s13 = sphi %s828_s13, %s1055_s13   ;;  %s789_s12 = sphi %s826_s12, %s1054_s12   ;;  %s785_s11 = sphi %s824_s11, %s1053_s11   ;;  %s781_s10 = sphi %s822_s10, %s1052_s10   ;;  %s777_s9 = sphi %s820_s9, %s1051_s9  }
   0x9   : > { %s33_s17 = sadd.s32 1, %s793_s13  ;;  %s42_s18 = sadd.s32 1, %s785_s11 }
   0xa   : > { %p35_p0 = scmp.ge.s32.totalorder %s33_s17, 2  ;;  %p49_p1 = scmp.ne.s32.totalorder %s785_s11, %s781_s10 }
   0xb   : > { %p50_p2 = scmp.eq.s32.totalorder %s797_s14, 0  ;;  %p55_p3 = scmp.ne.s32.totalorder %s781_s10, %s777_s9 }
   0xc   : > { %s1057_s17 = smov (%p35_p0, %s33_s17), 0  ;;  %p56_p5 = scmp.eq.s32.totalorder %s515_s15, 0 }
   0xd   : > { %p861_p4 = por %p50_p2, %p49_p1  ;;  %s37_s20 = ssub.s32 %s793_s13, %s1057_s17 }
   0xe   : > { %p107_p6 = scmp.eq.s32.totalorder %s515_s15, 1  ;;  %p40_p7 = scmp.eq.s32.totalorder %s37_s20, 0 }
   0xf   : > { %p867_p8 = por %p56_p5, %p55_p3  ;;  %p113_p10 = scmp.eq.s32.totalorder %s516_s16, 1 }
  0x10   : > { %p871_p9 = por %p107_p6, %p49_p1  ;;  %p518_p12 = scmp.ge.s32.totalorder %s797_s14, 2 }
  0x11   : > { %s876_s23 = scalar_select %p40_p7, %s785_s11, %s42_s18  }
  0x12   : > { %p878_p11 = por %p113_p10, %p55_p3  ;;  %p579_p13 = scmp.lt.s32.totalorder %s797_s14, 2 }
  0x13   : > { %s885_s25 = sand.u32 1, %s785_s11   ;;  %s558_s27 = sshll.u32 %s793_s13, 5 }
  0x14   : > { %s519_s26 = sshll.u32 %s885_s25, 5  ;;  %s143_s30 = scalar_lea.hbm %s1041_s0, %s558_s27 }
  0x15   : > { %s137_s3 = scalar_lea.vmem [#allocation2], %s519_s26  ;;  %s144_s5 = sshll.u32 %s143_s30, 4  ;;  %s145_s5 = int_to_ptr.hbm [resolvable:$true] %s144_s5 }
  0x16   : > { %s146_s4 = sshll.u32 %s137_s3, 4  ;;  %p894_p0 = pnand %p579_p13, %p861_p4  ;;  %s147_s4 = int_to_ptr.vmem [resolvable:$true] %s146_s4 }
  0x17   : > { %p525_p1 = scmp.ge.s32.totalorder %s797_s14, 1  ;;  %s134_s7 = scalar_lea.sflag [#allocation3], %s885_s25 }
  0x18   : > { %s799_s8 = smov 128   ;;  %s800_s15 = smov 8  }
  0x19   : > { %571 = dma.hbm_to_vmem [thread:$0]  (!%p894_p0), %s145_s5, 512, %s147_s4, %s134_s7, %s799_s8, %s799_s8, %s800_s15  }
  0x1a   : > { %p177_p2 = scmp.lt.s32.totalorder %s797_s14, 3  ;;  %s166_s20 = scalar_lea.hbm %s1042_s1, %s558_s27 }
  0x1b   : > { %s167_s28 = sshll.u32 %s166_s20, 4  ;;  %s160_s19 = scalar_lea.vmem [#allocation5], %s519_s26  ;;  %s168_s28 = int_to_ptr.hbm [resolvable:$true] %s167_s28 }
  0x1c   : > { %p178_p3 = pnand %p525_p1, %p177_p2  ;;  %s169_s29 = sshll.u32 %s160_s19, 4  ;;  %s170_s29 = int_to_ptr.vmem [resolvable:$true] %s169_s29 }
  0x1d   : > { %s157_s30 = scalar_lea.sflag [#allocation6], %s885_s25  ;;  %s910_s3 = sand.u32 (!%p178_p3), 1, %s781_s10  }
  0x1e   : > { %574 = dma.hbm_to_vmem [thread:$0]  (!%p894_p0), %s168_s28, 512, %s170_s29, %s157_s30, %s799_s8, %s799_s8, %s800_s15  }
  0x1f   : > { %181 = sbr.rel (%p178_p3) target bundleno = 91 (0x5b), region = 28  ;;  %s526_s4 = sshll.u32 (!%p178_p3), %s910_s3, 5 }
  0x20   : > { %s184_s5 = scalar_lea.sflag (!%p178_p3), [#allocation3], %s910_s3  ;;  %s187_s7 = scalar_lea.vmem (!%p178_p3), [#allocation2], %s526_s4 }
  0x24   : > { %764 = dma.done.wait (%p867_p8), %s184_s5, 512  }
  0x25   : > { %766 = vsyncadd (%p867_p8), %s184_s5, 4294966784  ;;  %s194_s25 = scalar_lea.sflag [#allocation6], %s910_s3  ;;  %s919_s26 = scalar_lea.vmem [#allocation5], %s526_s4 }
  0x26   : > { %768 = dma.done.wait (%p867_p8), %s194_s25, 512  }
  0x27   : > { %770 = vsyncadd (%p867_p8), %s194_s25, 4294966784  ;;  %v253_v0 = vlaneseq  ;;  %v239_v4 = vld [vmem:[%s187_s7] sm:$0xff]  ;;  %v528_v5 = vld [vmem:[%s187_s7 + $0x8] sm:$0xff]  ;;  %s560_s21 = smul.u32 88, %s910_s3  ;;  %v801_v20 = vmov 0.0   ;;  %v802_v42 = vmov 0.5  }
  0x28   : > { %v529_v6 = vld [vmem:[%s187_s7 + $0x10] sm:$0xff]  ;;  %v265_v7 = vmax.f32 %v239_v4, %v528_v5  ;;  %v530_v8 = vld [vmem:[%s187_s7 + $0x18] sm:$0xff]  ;;  %v246_v16 = vld [vmem:[%s919_s26] sm:$0xff]  ;;  %s561_s6 = smul.u32 88, %s789_s12  ;;  %s392_s20 = scalar_lea.sflag [#allocation4], %s910_s3 }
  0x29   : > { %v254_v1 = vshrl.u32 %v253_v0, 7  ;;  %v256_v2 = vand.u32 127, %v253_v0  ;;  %v934_v19 = vld [vmem:[%s919_s26 + $0x8] sm:$0xff]  ;;  %v939_v24 = vld [vmem:[%s919_s26 + $0x10] sm:$0xff]  ;;  %v942_v25 = vld [vmem:[%s919_s26 + $0x18] sm:$0xff]  ;;  %s953_s27 = scalar_lea.vmem [#allocation7], %s560_s21 }
  0x2a   : > { %v266_v10 = vmax.f32 %v265_v7, %v529_v6  ;;  %v321_v26 = vadd.f32 %v934_v19, %v246_v16  ;;  %v289_v30 = vadd.f32 %v939_v24, %v246_v16  ;;  %s403_s12 = scalar_lea.hbm %s1043_s2, %s561_s6  ;;  %s404_s16 = sshll.u32 %s953_s27, 4  ;;  %s405_s16 = int_to_ptr.vmem [resolvable:$true] %s404_s16 }
  0x2b   : > { %v260_v3 = vmul.u32 128, %v254_v1  ;;  %s406_s18 = sshll.u32 %s403_s12, 4  ;;  %s731_s4 = scalar_lea.hbm %s1043_s2, 176  ;;  %s407_s18 = int_to_ptr.hbm [resolvable:$true] %s406_s18 }
  0x2c   : > { %v925_v11 = vmax.f32 %v266_v10, %v530_v8  ;;  %vm322_vm1 = vcmp.gt.f32.partialorder %v939_v24, %v321_v26  ;;  %v290_v36 = vadd.f32 %v942_v25, %v289_v30  ;;  %s725_s28 = sshra.s32 %s407_s18, 4  ;;  %s726_s28 = int_to_ptr.hbm [resolvable:$true] %s725_s28 }
  0x2d   : > { %v261_v9 = vadd.s32 %v260_v3, %v256_v2  ;;  %v323_v38 = vsel %vm322_vm1, %v939_v24, %v321_v26  ;;  %v324_v40 = vsel %vm322_vm1, %v529_v6, %v265_v7  ;;  %v325_v43 = vsel %vm322_vm1, 1.0, %v802_v42  ;;  %s727_s19 = scalar_lea.hbm %s726_s28, 88  ;;  %p732_p7 = scmp.lt.s32.totalorder %s726_s28, %s1043_s2 }
  0x2e   : > { %v268_v12 = vsub.f32 %v528_v5, %v925_v11  ;;  %v294_v13 = vsub.f32 %v265_v7, %v925_v11  ;;  %v297_v14 = vsub.f32 %v529_v6, %v925_v11  ;;  %v300_v15 = vsub.f32 %v530_v8, %v925_v11  ;;  %p728_p4 = scmp.ne.s32.totalorder %s726_s28, %s727_s19  ;;  %p733_p8 = scmp.lt.s32.totalorder %s731_s4, %s727_s19 }
  0x2f   : > { %vm262_vm0 = vcmp.lt.s32.totalorder %v261_v9, 256  ;;  %vm326_vm2 = vcmp.gt.f32.partialorder %v942_v25, %v323_v38  ;;  %vm291_vm3 = vcmp.gt.f32.partialorder %v934_v19, %v290_v36 }
  0x30   : > { %v269_v17 = vmul.f32 1.442695, %v268_v12  ;;  %v295_v18 = vmul.f32 1.442695, %v294_v13  ;;  %v936_v21 = vsel %vm262_vm0, 1.0, %v801_v20  ;;  %v327_v44 = vsel %vm326_vm2, %v530_v8, %v324_v40  ;;  %p729_p5 = pnand %p728_p4, %p871_p9  ;;  %p734_p10 = por %p733_p8, %p732_p7 }
  0x31   : > { %v298_v22 = vmul.f32 1.442695, %v297_v14  ;;  %v301_v23 = vmul.f32 1.442695, %v300_v15  ;;  %v349_v27 = vmul.f32 %v936_v21, %v934_v19  ;;  %v366_v28 = vmul.f32 %v936_v21, %v939_v24 }
  0x32   : > { %635 = vpow2.f32 %v269_v17  ;;  %v383_v29 = vmul.f32 %v936_v21, %v942_v25  ;;  %v292_v46 = vsel %vm291_vm3, %v268_v12, 0.0  ;;  %v328_v54 = vsel %vm326_vm2, 1.0, %v325_v43  ;;  %p730_p6 = pneg %p729_p5 }
  0x33   : > { %637 = vpow2.f32 %v295_v18  ;;  %540 = vst [vmem:[%s953_s27 + $0x18] sm:$0xff] %v349_v27  ;;  %v329_v55 = vsub.f32 %v327_v44, %v925_v11 }
  0x34   : > { %639 = vpow2.f32 %v298_v22  ;;  %546 = vst [vmem:[%s953_s27 + $0x30] sm:$0xff] %v366_v28  ;;  %p735_p13 = pnand %p734_p10, %p730_p6 }
  0x35   : > { %641 = vpow2.f32 %v301_v23  ;;  %552 = vst [vmem:[%s953_s27 + $0x48] sm:$0xff] %v383_v29 }
  0x38   : > { %v636_v31 = vpop.eup %635 }
  0x39   : > { %v638_v32 = vpop.eup %637  ;;  %v271_v33 = vadd.f32 1.0, %v636_v31 }
  0x3a   : > { %v957_v34 = vpop.eup %639 }
  0x3b   : > { %v642_v35 = vpop.eup %641  ;;  %643 = vrcp.f32 %v271_v33  ;;  %v303_v37 = vadd.f32 %v957_v34, %v638_v32  ;;  %v281_v48 = vand.u32 2147483647, %v271_v33  ;;  %v283_v49 = vand.u32 2147483648, %v271_v33 }
  0x3c   : > { %645 = vlog2.f32 %v271_v33  ;;  %vm277_vm4 = vweird.f32 %v271_v33 }
  0x3d   : > { %v304_v39 = vadd.f32 %v642_v35, %v303_v37  ;;  %vm976_vm6 = vcmp.eq.f32.partialorder %v281_v48, 8.507059e+37  ;;  %v284_v59 = vor.u32 1.1754944e-38, %v283_v49 }
  0x3f   : > { %647 = vrcp.f32 %v304_v39  ;;  %vm310_vm8 = vweird.f32 %v304_v39  ;;  %v316_v63 = vand.u32 2147483648, %v304_v39  ;;  %v314_v2 = vand.u32 2147483647, %v304_v39 }
  0x40   : > { %649 = vlog2.f32 %v304_v39 }
  0x41   : > { %v644_v41 = vpop.eup %643  ;;  %v317_v8 = vor.u32 1.1754944e-38, %v316_v63  ;;  %vm315_vm11 = vcmp.eq.f32.partialorder %v314_v2, 8.507059e+37 }
  0x42   : > { %v646_v45 = vpop.eup %645  ;;  %v273_v47 = vmul.f32 %v644_v41, %v271_v33  ;;  %vm278_vm5 = vweird.f32 %v644_v41 }
  0x43   : > { %v288_v50 = vmul.f32 0.6931472, %v646_v45  ;;  %vm279_vm7 = vmor %vm277_vm4, %vm278_vm5 }
  0x44   : > { %v274_v51 = vsub.f32 1.0, %v273_v47 }
  0x45   : > { %v648_v52 = vpop.eup %647  ;;  %v293_v53 = vsub.f32 %v288_v50, %v292_v46 }
  0x46   : > { %v650_v56 = vpop.eup %649  ;;  %v275_v57 = vmul.f32 %v644_v41, %v274_v51  ;;  %v306_v60 = vmul.f32 %v648_v52, %v304_v39  ;;  %vm311_vm9 = vweird.f32 %v648_v52 }
  0x47   : > { %v333_v61 = vmul.f32 %v936_v21, %v293_v53  ;;  %v320_v62 = vmul.f32 0.6931472, %v650_v56  ;;  %vm312_vm10 = vmor %vm310_vm8, %vm311_vm9 }
  0x48   : > { %v276_v0 = vadd.f32 %v644_v41, %v275_v57  ;;  %v307_v1 = vsub.f32 1.0, %v306_v60 }
  0x49   : > { %v330_v3 = vsub.f32 %v320_v62, %v329_v55  ;;  %335 = vst [vmem:[%s953_s27] sm:$0xff] %v333_v61 }
  0x4a   : > { %v280_v4 = vsel %vm279_vm7, %v644_v41, %v276_v0  ;;  %v308_v5 = vmul.f32 %v648_v52, %v307_v1 }
  0x4b   : > { %v331_v6 = vmul.f32 %v330_v3, %v328_v54  ;;  %v285_v7 = vsel %vm976_vm6, %v284_v59, %v280_v4 }
  0x4c   : > { %v286_v9 = vmul.f32 %v636_v31, %v285_v7  ;;  %v309_v10 = vadd.f32 %v648_v52, %v308_v5 }
  0x4d   : > { %v338_v11 = vmul.f32 %v936_v21, %v331_v6 }
  0x4e   : > { %v341_v12 = vmul.f32 %v934_v19, %v286_v9  ;;  %v354_v13 = vmul.f32 %v936_v21, %v286_v9  ;;  %v313_v14 = vsel %vm312_vm10, %v648_v52, %v309_v10 }
  0x4f   : > { %v318_v15 = vsel %vm315_vm11, %v317_v8, %v313_v14  ;;  %536 = vst [vmem:[%s953_s27 + $0x8] sm:$0xff] %v338_v11 }
  0x50   : > { %v344_v16 = vmul.f32 %v936_v21, %v341_v12  ;;  %v357_v17 = vmul.f32 %v957_v34, %v318_v15  ;;  %v374_v18 = vmul.f32 %v642_v35, %v318_v15  ;;  %542 = vst [vmem:[%s953_s27 + $0x20] sm:$0xff] %v354_v13 }
  0x52   : > { %v358_v19 = vmul.f32 %v939_v24, %v357_v17  ;;  %v371_v20 = vmul.f32 %v936_v21, %v357_v17  ;;  %v375_v22 = vmul.f32 %v942_v25, %v374_v18  ;;  %v388_v23 = vmul.f32 %v936_v21, %v374_v18  ;;  %538 = vst [vmem:[%s953_s27 + $0x10] sm:$0xff] %v344_v16 }
  0x54   : > { %v361_v26 = vmul.f32 %v936_v21, %v358_v19  ;;  %v378_v27 = vmul.f32 %v936_v21, %v375_v22  ;;  %548 = vst [vmem:[%s953_s27 + $0x38] sm:$0xff] %v371_v20 }
  0x55   : > { %554 = vst [vmem:[%s953_s27 + $0x50] sm:$0xff] %v388_v23 }
  0x56   : > { %544 = vst [vmem:[%s953_s27 + $0x28] sm:$0xff] %v361_v26 }
  0x57   : > { %550 = vst [vmem:[%s953_s27 + $0x40] sm:$0xff] %v378_v27 }
  0x58   : > { %738 = shalt.err (!%p735_p13)
}
  0x59   : > { %s803_s3 = smov 128   ;;  %s804_s25 = smov 8  }
  0x5a   : > { %566 = dma.vmem_to_hbm [thread:$0]  (%p871_p9), %s405_s16, 1408, %s407_s18, %s392_s20, %s803_s3, %s803_s3, %s804_s25  }
  0x5b PF: > { %s421_s26 = sand.u32 1, %s777_s9   ;;  %p576_p0 = pnand %p518_p12, %p878_p11 }
  0x5c   : > { %s422_s21 = scalar_lea.sflag [#allocation4], %s421_s26 }
  0x5d   : > { %p577_p1 = pneg %p576_p0 }
  0x5f   : > { %772 = dma.done.wait (%p577_p1), %s422_s21, 1408  }
  0x60   : > { %774 = vsyncadd (%p577_p1), %s422_s21, 4294965888  ;;  %s21_s14 = sadd.s32 1, %s797_s14   ;;  %s1051_s9 = smov %s781_s10 }
  0x61   : > { %p18_p2 = scmp.ge.s32.totalorder %s21_s14, 4   ;;  %s1052_s10 = smov %s785_s11 }
  0x62   : > { %s1053_s11 = smov %s876_s23  ;;  %s1054_s12 = smov %s793_s13 }
  0x63   : > { %s1055_s13 = smov %s1057_s17  ;;  %20 = sbr.rel (!%p18_p2) target bundleno = 8 (0x8), region = 106 }
  0x68   :  { %428 = vsyncpa [#allocation3], 1 }
  0x69   :  { %430 = vsyncpa [#allocation3 + $0x1], 1 }
  0x6a   :  { %431 = vsyncpa [#allocation6], 1 }
  0x6b   :  { %433 = vsyncpa [#allocation6 + $0x1], 1 }
  0x6c   :  { %434 = vsyncpa [#allocation4], 1 }
  0x6d   :  { %436 = vsyncpa [#allocation4 + $0x1], 1 }

</bundles_post_ra>
